<compile_context>
chip_gen: v6e
topology: v6e:2x2x1
jax: 0.10.0
libtpu: 0.0.40
codegen_flags: <defaults>
</compile_context>

<pallas_src>
import jax
import jax.numpy as jnp
from jax import lax
from jax.experimental import pallas as pl
from jax.experimental.pallas import tpu as pltpu

# ---- synthetic config (mirrors config['text_embedding'] / config['tokenizer']) ----
MAX_LEN = 8        # config['tokenizer']['max_length']
D_FEAT  = 32       # config['text_embedding']['d_features']
D_MODEL = 32       # config['text_embedding']['d_model']
PAD_ID  = 0        # vocab.pad_token_id()
_INV_SQRT2 = 0.7071067811865475
DEFAULT_TOK_BLOCK = 256      # review: 256-1024 tokens per grid step at production sizes


def _round_up(x, m):
    return ((x + m - 1) // m) * m


def _vmem_capacity_bytes():
    try:
        return int(pltpu.get_tpu_info().vmem_capacity_bytes)
    except Exception:
        return 64 << 20      # conservative default: v7x per-TensorCore VMEM


def fold_embedding_params(emb_table, proj_w, proj_b):
    """Fold nn.Embedding @ nn.Linear into one table ONCE at weight-load time.

    Hoisted out of the forward path (review): under jit this matmul no longer re-runs
    per call.  Returns (hi, lo, bias2d) where hi + lo reconstructs emb_table @ proj_w
    to ~2^-17 relative error (split-bf16 storage for an exact one-hot MXU gather).
    """
    fused = jnp.dot(emb_table, proj_w, preferred_element_type=jnp.float32,
                    precision=lax.Precision.HIGHEST)                     # (V, M) f32
    hi = fused.astype(jnp.bfloat16)
    lo = (fused - hi.astype(jnp.float32)).astype(jnp.bfloat16)
    return hi, lo, proj_b.reshape(1, -1).astype(jnp.float32)


def _bias_gelu(x, bias):
    x = x + bias
    return 0.5 * x * (1.0 + lax.erf(x * jnp.float32(_INV_SQRT2)))


def _gather_bias_gelu_kernel(ids_ref,    # VMEM (TB, 1)  i32   per-block token ids
                             hi_ref,     # VMEM (V, M)   bf16  fused table, hi half (resident)
                             lo_ref,     # VMEM (V, M)   bf16  fused table, lo half (resident)
                             bias_ref,   # VMEM (1, M)   f32   proj bias (resident)
                             out_ref):   # VMEM (TB, M)  f32   output block
    tb = ids_ref.shape[0]
    v = hi_ref.shape[0]
    # On-chip gather: one-hot rows (exactly 0/1 in bf16) x resident table on the MXU.
    # No HBM DMA, no semaphores; exact because 1.0 * bf16_value accumulates in f32.
    eq = lax.broadcasted_iota(jnp.int32, (tb, v), 1) == ids_ref[...]      # (TB, V) bool
    one_hot = jnp.where(eq, 1.0, 0.0).astype(jnp.bfloat16)                # (TB, V)
    x = jnp.dot(one_hot, hi_ref[...], preferred_element_type=jnp.float32)  # (TB, M) f32
    x = x + jnp.dot(one_hot, lo_ref[...], preferred_element_type=jnp.float32)
    # bias + exact (erf) GELU, all f32 on the VPU (erf is a VPU polynomial).
    # Dropout = identity in eval mode, so it is omitted.
    # TODO(synk): train-mode dropout would use pltpu.prng_seed + stateful_bernoulli.
    x = x + bias_ref[...]
    out_ref[...] = 0.5 * x * (1.0 + lax.erf(x * jnp.float32(_INV_SQRT2)))


def usual_embedding_forward(token_ids, fused_hi, fused_lo, bias2d,
                            *, tok_block=DEFAULT_TOK_BLOCK):
    """token_ids (B, L) int32 -> (out (B, L, M) f32, padding_mask (B, L) bool)."""
    B, L = token_ids.shape
    V, M = fused_hi.shape
    N = B * L

    # Padding mask: exact integer compare in the wrapper.  Matches the original
    # generate_padding_mask-on-embeddings semantics when the PAD embedding row is the
    # pad sentinel (the toy init zeroes it) — documented coupling.
    padding_mask = token_ids == PAD_ID

    # Clamp defensively so an out-of-vocab id can never index past the table.
    # TODO(synk): PyTorch nn.Embedding would raise on OOV ids; here they map to V-1.
    ids_flat = jnp.clip(token_ids.reshape(-1).astype(jnp.int32), 0, V - 1)

    # Per-generation VMEM-residency gate (~48 MiB usable on v7x, ~96 MiB on v5e/v6e).
    table_bytes = (fused_hi.size + fused_lo.size) * 2        # bf16 pair == one f32 table
    vmem_cap = _vmem_capacity_bytes()
    if table_bytes > (vmem_cap * 3) // 4:
        # TODO(synk): production fallback should be a double-buffered HBM row-gather
        # Pallas kernel (memory_space=pl.ANY + make_async_copy prefetched one block
        # ahead); plain-XLA gather keeps huge-vocab configs correct in the meantime.
        table = fused_hi.astype(jnp.float32) + fused_lo.astype(jnp.float32)
        out = _bias_gelu(table[ids_flat], bias2d).reshape(B, L, M)
        return out, padding_mask

    tok_block = max(8, min(tok_block, _round_up(N, 8)))       # multiple of 8 sublanes
    n_pad = _round_up(N, tok_block)
    ids_2d = jnp.pad(ids_flat, (0, n_pad - N),
                     constant_values=PAD_ID).reshape(n_pad, 1)

    # Leave headroom for the double-buffered ids/out blocks and the one-hot temp.
    vmem_limit = max(32 << 20, min(table_bytes + (24 << 20), vmem_cap - (4 << 20)))

    out_flat = pl.pallas_call(
        _gather_bias_gelu_kernel,
        out_shape=jax.ShapeDtypeStruct((n_pad, M), jnp.float32),
        grid_spec=pltpu.PrefetchScalarGridSpec(
            num_scalar_prefetch=0,
            grid=(n_pad // tok_block,),
            in_specs=[
                pl.BlockSpec((tok_block, 1), lambda i: (i, 0)),   # per-block ids (VMEM)
                pl.BlockSpec((V, M), lambda i: (0, 0)),           # table hi — resident
                pl.BlockSpec((V, M), lambda i: (0, 0)),           # table lo — resident
                pl.BlockSpec((1, M), lambda i: (0, 0)),           # bias — resident
            ],
            out_specs=pl.BlockSpec((tok_block, M), lambda i: (i, 0)),
        ),
        compiler_params=pltpu.CompilerParams(
            dimension_semantics=("parallel",),                    # megacore on v7x
            vmem_limit_bytes=int(vmem_limit),
        ),
    )(ids_2d, fused_hi, fused_lo, bias2d)

    out = out_flat[:N].reshape(B, L, M)
    return out, padding_mask


# -------------------- Python-side glue: tiny vocab + tokenizer --------------------
# TODO(synk): string tokenization / Vocab lookup has no Pallas equivalent; done in Python.
def build_vocab():
    specials = ["[PAD]", "[CLS]", "[SEP]", "[UNK]"]
    words = ["the", "cat", "sat", "on", "mat", "a", "dog", "runs", "fast", "blue", "sky"]
    return {w: i for i, w in enumerate(specials + words)}


def tokenize(input_texts, word_to_idx, max_length):
    X = []
    unk = word_to_idx["[UNK]"]
    for s in input_texts:
        sen = [word_to_idx["[CLS]"]]
        for w in s.split():
            sen.append(word_to_idx.get(w, unk))
        sen = sen[: max_length - 1]
        sen.append(word_to_idx["[SEP]"])
        sen = sen + [PAD_ID] * (max_length - len(sen))
        X.append(sen)
    return jnp.array(X, dtype=jnp.int32)


if __name__ == "__main__":
    word_to_idx = build_vocab()
    vocab_size = 64  # padded-up vocab size for the embedding table

    # deterministic parameter init
    key = jax.random.PRNGKey(0)
    k_emb, k_w, k_b = jax.random.split(key, 3)
    emb_table = jax.random.normal(k_emb, (vocab_size, D_FEAT), dtype=jnp.float32)
    emb_table = emb_table.at[PAD_ID].set(0.0)   # PAD row == pad sentinel (mask coupling)
    bound = 1.0 / (D_FEAT ** 0.5)
    proj_w = jax.random.uniform(k_w, (D_FEAT, D_MODEL), jnp.float32, -bound, bound)
    proj_b = jax.random.uniform(k_b, (1, D_MODEL), jnp.float32, -bound, bound)

    input_texts = ["the cat sat on the mat", "a blue dog runs"]
    token_ids = tokenize(input_texts, word_to_idx, MAX_LEN)      # (2, 8) int32

    # Weight fold happens ONCE here (hoisted out of the forward path per review).
    fused_hi, fused_lo, bias2d = fold_embedding_params(emb_table, proj_w, proj_b)

    out, padding_mask = usual_embedding_forward(token_ids, fused_hi, fused_lo, bias2d)
    jax.block_until_ready((out, padding_mask))

    # pure-JAX reference: embedding -> linear -> exact GELU (dropout identity in eval)
    emb = emb_table[token_ids]                                   # (B, L, D)
    ref = jnp.einsum("bld,dm->blm", emb, proj_w,
                     precision=lax.Precision.HIGHEST) + proj_b.reshape(1, 1, D_MODEL)
    ref = 0.5 * ref * (1.0 + lax.erf(ref * _INV_SQRT2))
    ref_mask = token_ids == PAD_ID

    assert out.shape == (2, MAX_LEN, D_MODEL)
    assert padding_mask.shape == (2, MAX_LEN)
    assert jnp.allclose(out, ref, atol=1e-4, rtol=1e-4), float(jnp.max(jnp.abs(out - ref)))
    assert bool(jnp.all(padding_mask == ref_mask))
    print("KERNEL_OK")
</pallas_src>

<mosaic_0001>
module attributes {stable_mosaic.version = 11 : i64} {
  func.func @_gather_bias_gelu_kernel(%arg0: i32, %arg1: memref<16x1xi32, #tpu.memory_space<vmem>>, %arg2: memref<64x32xbf16, #tpu.memory_space<vmem>>, %arg3: memref<64x32xbf16, #tpu.memory_space<vmem>>, %arg4: memref<1x32xf32, #tpu.memory_space<vmem>>, %arg5: memref<16x32xf32, #tpu.memory_space<vmem>>) attributes {dimension_semantics = [#tpu.dimension_semantics<parallel>], iteration_bounds = array<i64: 1>, scalar_prefetch = 0 : i64, scratch_operands = 0 : i64, tpu.core_type = #tpu.core_type<tc>, window_params = [{transform_indices = @transform_0, window_bounds = array<i64: 16, 1>}, {pipeline_mode = #tpu.pipeline_mode<synchronous>, transform_indices = @transform_1, window_bounds = array<i64: 64, 32>}, {pipeline_mode = #tpu.pipeline_mode<synchronous>, transform_indices = @transform_2, window_bounds = array<i64: 64, 32>}, {pipeline_mode = #tpu.pipeline_mode<synchronous>, transform_indices = @transform_3, window_bounds = array<i64: 1, 32>}, {transform_indices = @transform_4, window_bounds = array<i64: 16, 32>}]} {
    %0 = tpu.iota {dimensions = array<i32: 1>} : vector<16x64xi32>
    %c0 = arith.constant 0 : index
    %c0_0 = arith.constant 0 : index
    %1 = vector.load %arg1[%c0, %c0_0] : memref<16x1xi32, #tpu.memory_space<vmem>>, vector<16x1xi32>
    %2 = vector.broadcast %1 : vector<16x1xi32> to vector<16x64xi32>
    %3 = arith.cmpi eq, %0, %2 : vector<16x64xi32>
    %cst = arith.constant 1.000000e+00 : f32
    %cst_1 = arith.constant 0.000000e+00 : f32
    %4 = vector.broadcast %cst : f32 to vector<16x64xf32>
    %5 = vector.broadcast %cst_1 : f32 to vector<16x64xf32>
    %6 = arith.select %3, %4, %5 : vector<16x64xi1>, vector<16x64xf32>
    %7 = arith.truncf %6 : vector<16x64xf32> to vector<16x64xbf16>
    %c0_2 = arith.constant 0 : index
    %c0_3 = arith.constant 0 : index
    %8 = vector.load %arg2[%c0_2, %c0_3] : memref<64x32xbf16, #tpu.memory_space<vmem>>, vector<64x32xbf16>
    %cst_4 = arith.constant dense<0.000000e+00> : vector<16x32xf32>
    %9 = tpu.matmul %7, %8, %cst_4 {dimension_numbers = #tpu.dot_dimension_numbers<[1], [0], [0], [1], [0, 0, 1, 1], [], []>} : vector<16x64xbf16>, vector<64x32xbf16>, vector<16x32xf32> -> vector<16x32xf32>
    %c0_5 = arith.constant 0 : index
    %c0_6 = arith.constant 0 : index
    %10 = vector.load %arg3[%c0_5, %c0_6] : memref<64x32xbf16, #tpu.memory_space<vmem>>, vector<64x32xbf16>
    %cst_7 = arith.constant dense<0.000000e+00> : vector<16x32xf32>
    %11 = tpu.matmul %7, %10, %cst_7 {dimension_numbers = #tpu.dot_dimension_numbers<[1], [0], [0], [1], [0, 0, 1, 1], [], []>} : vector<16x64xbf16>, vector<64x32xbf16>, vector<16x32xf32> -> vector<16x32xf32>
    %12 = arith.addf %9, %11 : vector<16x32xf32>
    %c0_8 = arith.constant 0 : index
    %c0_9 = arith.constant 0 : index
    %13 = vector.load %arg4[%c0_8, %c0_9] : memref<1x32xf32, #tpu.memory_space<vmem>>, vector<1x32xf32>
    %14 = vector.broadcast %13 : vector<1x32xf32> to vector<16x32xf32>
    %15 = arith.addf %12, %14 : vector<16x32xf32>
    %cst_10 = arith.constant 5.000000e-01 : f32
    %16 = vector.broadcast %cst_10 : f32 to vector<16x32xf32>
    %17 = arith.mulf %16, %15 : vector<16x32xf32>
    %cst_11 = arith.constant 0.707106769 : f32
    %18 = vector.broadcast %cst_11 : f32 to vector<16x32xf32>
    %19 = arith.mulf %15, %18 : vector<16x32xf32>
    %20 = math.erf %19 : vector<16x32xf32>
    %cst_12 = arith.constant 1.000000e+00 : f32
    %21 = vector.broadcast %cst_12 : f32 to vector<16x32xf32>
    %22 = arith.addf %21, %20 : vector<16x32xf32>
    %23 = arith.mulf %17, %22 : vector<16x32xf32>
    %c0_13 = arith.constant 0 : index
    %c0_14 = arith.constant 0 : index
    %24 = vector.load %arg5[%c0_13, %c0_14] : memref<16x32xf32, #tpu.memory_space<vmem>>, vector<16x32xf32>
    tpu.vector_store %arg5[%c0_13, %c0_14], %23 {strides = array<i32>} : memref<16x32xf32, #tpu.memory_space<vmem>>, vector<16x32xf32>,
    return
  }
  func.func @transform_0(%arg0: i32) -> (i32, i32) {
    %c0_i32 = arith.constant 0 : i32
    %c0_i32_0 = arith.constant 0 : i32
    return %arg0, %c0_i32 : i32, i32
  }
  func.func @transform_1(%arg0: i32) -> (i32, i32) {
    %c0_i32 = arith.constant 0 : i32
    %c0_i32_0 = arith.constant 0 : i32
    %c0_i32_1 = arith.constant 0 : i32
    return %c0_i32, %c0_i32_0 : i32, i32
  }
  func.func @transform_2(%arg0: i32) -> (i32, i32) {
    %c0_i32 = arith.constant 0 : i32
    %c0_i32_0 = arith.constant 0 : i32
    %c0_i32_1 = arith.constant 0 : i32
    return %c0_i32, %c0_i32_0 : i32, i32
  }
  func.func @transform_3(%arg0: i32) -> (i32, i32) {
    %c0_i32 = arith.constant 0 : i32
    %c0_i32_0 = arith.constant 0 : i32
    %c0_i32_1 = arith.constant 0 : i32
    return %c0_i32, %c0_i32_0 : i32, i32
  }
  func.func @transform_4(%arg0: i32) -> (i32, i32) {
    %c0_i32 = arith.constant 0 : i32
    %c0_i32_0 = arith.constant 0 : i32
    return %arg0, %c0_i32 : i32, i32
  }
}

</mosaic_0001>

<bundles_post_ra>
// kernel: tpu_custom_call.1
= control target key start
LH: loop header
LB: loop body
LE: loop exit
PB: predicated region body
PF: predicated region fallthrough
CT: control target
= control target key end

     0   :  { %v308_v1 = vmov 0   ;;  %v309_v3 = vmov 0.0   ;;  %vm310_vm0 = vmmov 0   ;;  %s375_s0 = inlined_call_operand.vmem [shape: s32[16,1], index: 0, kind: input, shape index: {}]   ;;  %s376_s1 = inlined_call_operand.vmem [shape: bf16[64,32], index: 1, kind: input, shape index: {}]   ;;  %s377_s2 = inlined_call_operand.vmem [shape: bf16[64,32], index: 2, kind: input, shape index: {}]   ;;  %s378_s3 = inlined_call_operand.vmem [shape: f32[1,32], index: 3, kind: input, shape index: {}]   ;;  %s379_s4 = inlined_call_operand.hbm [shape: f32[16,32], index: 4, kind: output, shape index: {}]  }
   0x1   :  { %v21_v0 = vld [vmem:[%s375_s0] sm:$0xff]  ;;  %273 = vset.pattern.permute.xlu0 %v308_v1  ;;  %v22_v2 = vld [vmem:[%s375_s0 + $0x8] sm:$0xff]  ;;  %243 = vmatprep.subr.bf16.mxu0 %v309_v3  ;;  %v274_v4 = vld [vmem:[%s377_s2 + $0x18] sm:$0xff]  }
   0x2   :  { %24 = vperm.xlu0 %273, %v21_v0   ;;  %255 = vmatprep.subr.bf16.mxu1 %v309_v3  ;;  %v275_v5 = vld [vmem:[%s376_s1 + $0x18] sm:$0xff]   ;;  %v276_v6 = vld [vmem:[%s377_s2 + $0x10] sm:$0xff]   ;;  %v278_v8 = vld [vmem:[%s377_s2 + $0x8] sm:$0xff]  }
   0x3   :  { %244 = vmatpush3.bf16.msra.mxu0 %v274_v4  ;;  %256 = vmatpush3.bf16.msra.mxu1 %v275_v5  ;;  %v277_v7 = vld [vmem:[%s376_s1 + $0x10] sm:$0xff]   ;;  %v279_v9 = vld [vmem:[%s376_s1 + $0x8] sm:$0xff]  }
   0x4   :  { %245 = vmatprep.subr.bf16.mxu0 %v309_v3  ;;  %257 = vmatprep.subr.bf16.mxu1 %v309_v3 }
   0x5   :  { %251 = vmatprep.mubr.msk.bf16.mxu0 %vm310_vm0, %v309_v3  ;;  %263 = vmatprep.mubr.msk.bf16.mxu1 %vm310_vm0, %v309_v3 }
   0x6   :  { %27 = vperm.xlu0 %273, %v22_v2  }
   0x7   :  { %246 = vmatpush3.bf16.msra.mxu0 %v276_v6  ;;  %258 = vmatpush3.bf16.msra.mxu1 %v277_v7 }
   0x8   :  { %247 = vmatprep.subr.bf16.mxu0 %v309_v3 }
   0x9   :  { %9 = vsyncpa [#allocation3], 0  ;;  %259 = vmatprep.subr.bf16.mxu1 %v309_v3  ;;  %v280_v10 = vld [vmem:[%s377_s2] sm:$0xff]   ;;  %v19_v12 = vlaneseq  ;;  %vm74_vm3 = vcmask 523264   ;;  %vm203_vm4 = vcmask 261120  }
   0xa   :  { %v281_v11 = vld [vmem:[%s376_s1] sm:$0xff]   ;;  %s311_s1 = smov [#allocation2]  }
   0xb   :  { %248 = vmatpush3.bf16.msra.mxu0 %v278_v8  ;;  %260 = vmatpush3.bf16.msra.mxu1 %v279_v9  ;;  %v20_v13 = vand.u32 127, %v19_v12  ;;  %v232_v21 = vld [vmem:[%s378_s3] ss:$0 sm:$0xff]  ;;  %s211_s3 = sshll.u32 %s311_s1, 4  ;;  %s212_s3 = int_to_ptr.vmem [resolvable:$true] %s211_s3 }
   0xc   :  { %249 = vmatprep.subr.bf16.mxu0 %v309_v3  ;;  %261 = vmatprep.subr.bf16.mxu1 %v309_v3  ;;  %s286_s9 = scalar_lea.vmem %s212_s3, 256  ;;  %p291_p1 = scmp.lt.s32.totalorder %s212_s3, %s212_s3 }
   0xd   :  { %p287_p0 = scmp.ne.s32.totalorder %s212_s3, %s286_s9  ;;  %p292_p2 = scmp.lt.s32.totalorder %s286_s9, %s286_s9 }
   0xf   :  { %250 = vmatpush3.bf16.msra.mxu0 %v280_v10  ;;  %262 = vmatpush3.bf16.msra.mxu1 %v281_v11  ;;  %p293_p3 = por %p292_p2, %p291_p1 }
  0x11   :  { %p294_p4 = pnand %p293_p3, %p287_p0 }
  0x7d   :  { %v25_v14 = vpop.permute.xlu0 %24 }
  0x7e   :  { %vm29_vm1 = vcmp.eq.s32.totalorder %v20_v13, %v25_v14 }
  0x7f   :  { %v31_v16 = vsel %vm29_vm1, 1.0, %v309_v3 }
  0x81   :  { %v28_v15 = vpop.permute.xlu0 %27 }
  0x82   :  { %vm30_vm2 = vcmp.eq.s32.totalorder %v20_v13, %v28_v15 }
  0x83   :  { %v32_v17 = vsel %vm30_vm2, 1.0, %v309_v3 }
  0x84   :  { %v33_v18 = vpack.c.bf16 %v32_v17, %v31_v16 }
  0x86   :  { %252 = vmatmul.mubr.msk.bf16.vlgmr.msra.gmra.mxu0 %vm74_vm3, %v33_v18  ;;  %264 = vmatmul.mubr.msk.bf16.vlgmr.msra.gmra.mxu1 %vm74_vm3, %v33_v18 }
 0x146   :  { %v112_v19 = vpop.f32.mrf.mxu0  ;;  %v177_v20 = vpop.f32.mrf.mxu1 }
 0x147   :  { %v178_v22 = vadd.f32 %v177_v20, %v112_v19 }
 0x148   :  { %v253_v23 = vpop.f32.mrf.mxu0  ;;  %v265_v24 = vpop.f32.mrf.mxu1 }
 0x149   :  { %v191_v25 = vadd.f32 %v232_v21, %v178_v22 }
 0x14a   :  { %v115_v26 = vpop.f32.mrf.mxu0  ;;  %v180_v27 = vpop.f32.mrf.mxu1 }
 0x14b   :  { %v195_v28 = vmul.f32 0.70710677, %v191_v25  ;;  %v181_v29 = vadd.f32 %v180_v27, %v115_v26  ;;  %v193_v35 = vmul.f32 0.5, %v191_v25 }
 0x14c   :  { %v254_v30 = vpop.f32.mrf.mxu0  ;;  %v266_v31 = vpop.f32.mrf.mxu1 }
 0x14d   :  { %282 = verf.f32 %v195_v28  ;;  %v192_v32 = vadd.f32 %v232_v21, %v181_v29 }
 0x14f   :  { %v196_v33 = vmul.f32 0.70710677, %v192_v32  ;;  %v194_v39 = vmul.f32 0.5, %v192_v32 }
 0x151   :  { %284 = verf.f32 %v196_v33 }
 0x15a   :  { %v283_v34 = vpop.eup %282 }
 0x15b   :  { %v199_v36 = vadd.f32 1.0, %v283_v34 }
 0x15d   :  { %v201_v37 = vmul.f32 %v199_v36, %v193_v35 }
 0x15e   :  { %v285_v38 = vpop.eup %284 }
 0x15f   :  { %v200_v40 = vadd.f32 1.0, %v285_v38  ;;  %204 = vst.msk [vmem:[#allocation2] sm:$0xff] %vm203_vm4, %v201_v37 }
 0x161   :  { %v202_v41 = vmul.f32 %v200_v40, %v194_v39 }
 0x163   :  { %205 = vst.msk [vmem:[#allocation2 + $0x8] sm:$0xff] %vm203_vm4, %v202_v41 }
 0x164   :  { %297 = shalt.err (!%p294_p4)
}
 0x165   :  { %s312_s10 = smov 128   ;;  %s313_s11 = smov 8  }
 0x166   :  { %217 = dma.vmem_to_hbm [thread:$0]  %s212_s3, 256, %s379_s4, [#allocation3], %s312_s10, %s312_s10, %s313_s11  }
 0x167   :  { %306 = dma.done.wait [#allocation3], 256  }
 0x168   :  { %307 = vsyncadd [#allocation3], 4294967040 }
 0x169   :  { %221 = vsyncpa [#allocation3], 1 }

</bundles_post_ra>
